<compile_context>
chip_gen: v6e
topology: v6e:2x2x1
jax: 0.10.0
libtpu: 0.0.40
codegen_flags: <defaults>
</compile_context>

<pallas_src>
import numpy as np
import jax
import jax.numpy as jnp
from jax.experimental import pallas as pl
from jax.experimental.pallas import tpu as pltpu


_NEG_SLOPE = 0.01  # nn.LeakyReLU() default negative slope


# --------------------------------- kernel -----------------------------------
def discriminator_kernel(x_ref, w1_ref, b1_ref, w2_ref, b2_ref,
                         w3_ref, b3_ref, w4_ref, b4_ref, out_ref):
    """One batch tile of the Discriminator forward pass.

    Matmuls: bf16 inputs, f32 accumulation on the MXU.
    Elementwise (LeakyReLU / sigmoid): f32 on the VPU/EUP.
    """
    def lsl(h, w_ref, b_ref):
        y = jnp.dot(h.astype(jnp.bfloat16), w_ref[...],
                    preferred_element_type=jnp.float32) + b_ref[...]
        return jnp.where(y > 0, y, _NEG_SLOPE * y)          # LeakyReLU (f32)

    h = lsl(x_ref[...], w1_ref, b1_ref)                     # [TB, Hp]
    h = lsl(h, w2_ref, b2_ref)                              # [TB, Hp]
    h = lsl(h, w3_ref, b3_ref)                              # [TB, Cp]
    logit = jnp.dot(h.astype(jnp.bfloat16), w4_ref[...],
                    preferred_element_type=jnp.float32) + b4_ref[...]  # [TB, Op]

    # sigmoid(x) = 1 / (1 + exp(-x)); exp and approx reciprocal go to the EUP.
    out_ref[...] = pl.reciprocal(1.0 + jnp.exp(-logit), approx=True)


# --------------------------------- wrapper ----------------------------------
def _round_up(n, m):
    return ((n + m - 1) // m) * m


def _pad2(a, rows, cols):
    return jnp.pad(a, ((0, rows - a.shape[0]), (0, cols - a.shape[1])))


def discriminator_forward(x, params, *, batch_tile=128):
    """params: f32 arrays; weights as [in_features, out_features] with the
    spectral norm already folded in, biases as [1, out_features]."""
    D = params["w1"].shape[0]
    H = params["w1"].shape[1]
    C = params["w3"].shape[1]          # = 2
    O = params["w4"].shape[1]          # = 1

    x2 = x.reshape(-1, D).astype(jnp.float32)
    B = x2.shape[0]

    # Lane/sublane-dense padding: feature dims to multiples of 128, batch to
    # the batch tile.  Zero-padding is exact through Linear + LeakyReLU; the
    # padded output columns are sliced away below.
    TB = batch_tile
    Bp = _round_up(max(B, 1), TB)
    Dp = _round_up(D, 128)
    Hp = _round_up(H, 128)
    Cp = _round_up(C, 128)
    Op = _round_up(O, 128)

    xp = _pad2(x2, Bp, Dp)
    bf16 = jnp.bfloat16
    w1 = _pad2(params["w1"], Dp, Hp).astype(bf16)
    w2 = _pad2(params["w2"], Hp, Hp).astype(bf16)
    w3 = _pad2(params["w3"], Hp, Cp).astype(bf16)
    w4 = _pad2(params["w4"], Cp, Op).astype(bf16)
    b1 = _pad2(params["b1"], 1, Hp)
    b2 = _pad2(params["b2"], 1, Hp)
    b3 = _pad2(params["b3"], 1, Cp)
    b4 = _pad2(params["b4"], 1, Op)

    grid = (Bp // TB,)
    resident = lambda i: (0, 0)        # weights/biases resident across tiles
    batch_map = lambda i: (i, 0)       # batch-tiled arrays

    flops = (2 * Bp * (Dp * Hp + Hp * Hp + Hp * Cp + Cp * Op)
             + 6 * Bp * (2 * Hp + Cp + Op))
    bytes_accessed = (4 * (Bp * Dp + Bp * Op)                       # x, out (f32)
                      + 2 * (Dp * Hp + Hp * Hp + Hp * Cp + Cp * Op) # bf16 weights
                      + 4 * (2 * Hp + Cp + Op))                     # f32 biases

    out = pl.pallas_call(
        discriminator_kernel,
        out_shape=jax.ShapeDtypeStruct((Bp, Op), jnp.float32),
        grid=grid,
        in_specs=[
            pl.BlockSpec((TB, Dp), batch_map),
            pl.BlockSpec((Dp, Hp), resident), pl.BlockSpec((1, Hp), resident),
            pl.BlockSpec((Hp, Hp), resident), pl.BlockSpec((1, Hp), resident),
            pl.BlockSpec((Hp, Cp), resident), pl.BlockSpec((1, Cp), resident),
            pl.BlockSpec((Cp, Op), resident), pl.BlockSpec((1, Op), resident),
        ],
        out_specs=pl.BlockSpec((TB, Op), batch_map),
        compiler_params=pltpu.CompilerParams(
            dimension_semantics=("parallel",),
            vmem_limit_bytes=64 << 20),
        cost_estimate=pl.CostEstimate(flops=flops,
                                      transcendentals=Bp * Op,
                                      bytes_accessed=bytes_accessed),
    )(xp, w1, b1, w2, b2, w3, b3, w4, b4)

    return out[:B, :O]


# ------------------------- pure-JAX reference -------------------------------
def discriminator_reference(x, params):
    D = params["w1"].shape[0]
    h = x.reshape(-1, D)

    def lsl(h, w, b):
        y = h @ w + b
        return jnp.where(y > 0, y, _NEG_SLOPE * y)

    h = lsl(h, params["w1"], params["b1"])
    h = lsl(h, params["w2"], params["b2"])
    h = lsl(h, params["w3"], params["b3"])
    logit = h @ params["w4"] + params["b4"]
    return jax.nn.sigmoid(logit)


# ------------------------- parameter construction ---------------------------
def linear_init(key, fan_in, fan_out):
    kw, kb = jax.random.split(key)
    bound = 1.0 / np.sqrt(fan_in)
    w = jax.random.uniform(kw, (fan_out, fan_in), jnp.float32, -bound, bound)
    b = jax.random.uniform(kb, (fan_out,), jnp.float32, -bound, bound)
    return w, b


def spectral_normalize(w):
    # TODO(synk): torch's spectral_norm uses 1-step power iteration; we fold in
    # the exact largest singular value (the quantity power iteration estimates).
    return w / jnp.linalg.norm(w, ord=2)


if __name__ == "__main__":
    # Small, forward-consistent shapes.
    B = 8
    data_shape = (1, 16, 3)                 # same data_shape as the GAN mesh
    D = int(np.prod(data_shape))            # 48
    hidden_dim = 32

    key = jax.random.PRNGKey(0)
    k1, k2, k3, k4, kx = jax.random.split(key, 5)

    w1, b1 = linear_init(k1, D, hidden_dim)
    w2, b2 = linear_init(k2, hidden_dim, hidden_dim)
    w3, b3 = linear_init(k3, hidden_dim, 2)
    w4, b4 = linear_init(k4, 2, 1)

    params = {
        "w1": spectral_normalize(w1).T, "b1": b1[None, :],
        "w2": spectral_normalize(w2).T, "b2": b2[None, :],
        "w3": spectral_normalize(w3).T, "b3": b3[None, :],
        "w4": w4.T,                     "b4": b4[None, :],   # fc4: plain Linear
    }

    x = jax.random.normal(kx, (B,) + data_shape, dtype=jnp.float32)

    out = discriminator_forward(x, params)
    out = jax.block_until_ready(out)

    ref = discriminator_reference(x, params)
    np.testing.assert_allclose(np.asarray(out), np.asarray(ref),
                               rtol=5e-2, atol=5e-2)
    assert out.shape == (B, 1) and out.dtype == jnp.float32

    print("KERNEL_OK")
</pallas_src>

<mosaic_0001>
module attributes {stable_mosaic.version = 11 : i64} {
  func.func @discriminator_kernel(%arg0: i32, %arg1: memref<128x128xf32, #tpu.memory_space<vmem>>, %arg2: memref<128x128xbf16, #tpu.memory_space<vmem>>, %arg3: memref<1x128xf32, #tpu.memory_space<vmem>>, %arg4: memref<128x128xbf16, #tpu.memory_space<vmem>>, %arg5: memref<1x128xf32, #tpu.memory_space<vmem>>, %arg6: memref<128x128xbf16, #tpu.memory_space<vmem>>, %arg7: memref<1x128xf32, #tpu.memory_space<vmem>>, %arg8: memref<128x128xbf16, #tpu.memory_space<vmem>>, %arg9: memref<1x128xf32, #tpu.memory_space<vmem>>, %arg10: memref<128x128xf32, #tpu.memory_space<vmem>>) attributes {dimension_semantics = [#tpu.dimension_semantics<parallel>], iteration_bounds = array<i64: 1>, scalar_prefetch = 0 : i64, scratch_operands = 0 : i64, tpu.core_type = #tpu.core_type<tc>, window_params = [{transform_indices = @transform_0, window_bounds = array<i64: 128, 128>}, {pipeline_mode = #tpu.pipeline_mode<synchronous>, transform_indices = @transform_1, window_bounds = array<i64: 128, 128>}, {pipeline_mode = #tpu.pipeline_mode<synchronous>, transform_indices = @transform_2, window_bounds = array<i64: 1, 128>}, {pipeline_mode = #tpu.pipeline_mode<synchronous>, transform_indices = @transform_3, window_bounds = array<i64: 128, 128>}, {pipeline_mode = #tpu.pipeline_mode<synchronous>, transform_indices = @transform_4, window_bounds = array<i64: 1, 128>}, {pipeline_mode = #tpu.pipeline_mode<synchronous>, transform_indices = @transform_5, window_bounds = array<i64: 128, 128>}, {pipeline_mode = #tpu.pipeline_mode<synchronous>, transform_indices = @transform_6, window_bounds = array<i64: 1, 128>}, {pipeline_mode = #tpu.pipeline_mode<synchronous>, transform_indices = @transform_7, window_bounds = array<i64: 128, 128>}, {pipeline_mode = #tpu.pipeline_mode<synchronous>, transform_indices = @transform_8, window_bounds = array<i64: 1, 128>}, {transform_indices = @transform_9, window_bounds = array<i64: 128, 128>}]} {
    %c0 = arith.constant 0 : index
    %c0_0 = arith.constant 0 : index
    %0 = vector.load %arg1[%c0, %c0_0] : memref<128x128xf32, #tpu.memory_space<vmem>>, vector<128x128xf32>
    %1 = arith.truncf %0 : vector<128x128xf32> to vector<128x128xbf16>
    %c0_1 = arith.constant 0 : index
    %c0_2 = arith.constant 0 : index
    %2 = vector.load %arg2[%c0_1, %c0_2] : memref<128x128xbf16, #tpu.memory_space<vmem>>, vector<128x128xbf16>
    %cst = arith.constant dense<0.000000e+00> : vector<128x128xf32>
    %3 = tpu.matmul %1, %2, %cst {dimension_numbers = #tpu.dot_dimension_numbers<[1], [0], [0], [1], [0, 0, 1, 1], [], []>} : vector<128x128xbf16>, vector<128x128xbf16>, vector<128x128xf32> -> vector<128x128xf32>
    %c0_3 = arith.constant 0 : index
    %c0_4 = arith.constant 0 : index
    %4 = vector.load %arg3[%c0_3, %c0_4] : memref<1x128xf32, #tpu.memory_space<vmem>>, vector<1x128xf32>
    %5 = vector.broadcast %4 : vector<1x128xf32> to vector<128x128xf32>
    %6 = arith.addf %3, %5 : vector<128x128xf32>
    %cst_5 = arith.constant 0.000000e+00 : f32
    %7 = vector.broadcast %cst_5 : f32 to vector<128x128xf32>
    %8 = arith.cmpf ogt, %6, %7 : vector<128x128xf32>
    %cst_6 = arith.constant 0.00999999977 : f32
    %9 = vector.broadcast %cst_6 : f32 to vector<128x128xf32>
    %10 = arith.mulf %9, %6 : vector<128x128xf32>
    %11 = arith.select %8, %6, %10 : vector<128x128xi1>, vector<128x128xf32>
    %12 = arith.truncf %11 : vector<128x128xf32> to vector<128x128xbf16>
    %c0_7 = arith.constant 0 : index
    %c0_8 = arith.constant 0 : index
    %13 = vector.load %arg4[%c0_7, %c0_8] : memref<128x128xbf16, #tpu.memory_space<vmem>>, vector<128x128xbf16>
    %cst_9 = arith.constant dense<0.000000e+00> : vector<128x128xf32>
    %14 = tpu.matmul %12, %13, %cst_9 {dimension_numbers = #tpu.dot_dimension_numbers<[1], [0], [0], [1], [0, 0, 1, 1], [], []>} : vector<128x128xbf16>, vector<128x128xbf16>, vector<128x128xf32> -> vector<128x128xf32>
    %c0_10 = arith.constant 0 : index
    %c0_11 = arith.constant 0 : index
    %15 = vector.load %arg5[%c0_10, %c0_11] : memref<1x128xf32, #tpu.memory_space<vmem>>, vector<1x128xf32>
    %16 = vector.broadcast %15 : vector<1x128xf32> to vector<128x128xf32>
    %17 = arith.addf %14, %16 : vector<128x128xf32>
    %cst_12 = arith.constant 0.000000e+00 : f32
    %18 = vector.broadcast %cst_12 : f32 to vector<128x128xf32>
    %19 = arith.cmpf ogt, %17, %18 : vector<128x128xf32>
    %cst_13 = arith.constant 0.00999999977 : f32
    %20 = vector.broadcast %cst_13 : f32 to vector<128x128xf32>
    %21 = arith.mulf %20, %17 : vector<128x128xf32>
    %22 = arith.select %19, %17, %21 : vector<128x128xi1>, vector<128x128xf32>
    %23 = arith.truncf %22 : vector<128x128xf32> to vector<128x128xbf16>
    %c0_14 = arith.constant 0 : index
    %c0_15 = arith.constant 0 : index
    %24 = vector.load %arg6[%c0_14, %c0_15] : memref<128x128xbf16, #tpu.memory_space<vmem>>, vector<128x128xbf16>
    %cst_16 = arith.constant dense<0.000000e+00> : vector<128x128xf32>
    %25 = tpu.matmul %23, %24, %cst_16 {dimension_numbers = #tpu.dot_dimension_numbers<[1], [0], [0], [1], [0, 0, 1, 1], [], []>} : vector<128x128xbf16>, vector<128x128xbf16>, vector<128x128xf32> -> vector<128x128xf32>
    %c0_17 = arith.constant 0 : index
    %c0_18 = arith.constant 0 : index
    %26 = vector.load %arg7[%c0_17, %c0_18] : memref<1x128xf32, #tpu.memory_space<vmem>>, vector<1x128xf32>
    %27 = vector.broadcast %26 : vector<1x128xf32> to vector<128x128xf32>
    %28 = arith.addf %25, %27 : vector<128x128xf32>
    %cst_19 = arith.constant 0.000000e+00 : f32
    %29 = vector.broadcast %cst_19 : f32 to vector<128x128xf32>
    %30 = arith.cmpf ogt, %28, %29 : vector<128x128xf32>
    %cst_20 = arith.constant 0.00999999977 : f32
    %31 = vector.broadcast %cst_20 : f32 to vector<128x128xf32>
    %32 = arith.mulf %31, %28 : vector<128x128xf32>
    %33 = arith.select %30, %28, %32 : vector<128x128xi1>, vector<128x128xf32>
    %34 = arith.truncf %33 : vector<128x128xf32> to vector<128x128xbf16>
    %c0_21 = arith.constant 0 : index
    %c0_22 = arith.constant 0 : index
    %35 = vector.load %arg8[%c0_21, %c0_22] : memref<128x128xbf16, #tpu.memory_space<vmem>>, vector<128x128xbf16>
    %cst_23 = arith.constant dense<0.000000e+00> : vector<128x128xf32>
    %36 = tpu.matmul %34, %35, %cst_23 {dimension_numbers = #tpu.dot_dimension_numbers<[1], [0], [0], [1], [0, 0, 1, 1], [], []>} : vector<128x128xbf16>, vector<128x128xbf16>, vector<128x128xf32> -> vector<128x128xf32>
    %c0_24 = arith.constant 0 : index
    %c0_25 = arith.constant 0 : index
    %37 = vector.load %arg9[%c0_24, %c0_25] : memref<1x128xf32, #tpu.memory_space<vmem>>, vector<1x128xf32>
    %38 = vector.broadcast %37 : vector<1x128xf32> to vector<128x128xf32>
    %39 = arith.addf %36, %38 : vector<128x128xf32>
    %cst_26 = arith.constant 0.000000e+00 : f32
    %40 = vector.broadcast %cst_26 : f32 to vector<128x128xf32>
    %41 = arith.subf %40, %39 : vector<128x128xf32>
    %42 = math.exp %41 : vector<128x128xf32>
    %cst_27 = arith.constant 1.000000e+00 : f32
    %43 = vector.broadcast %cst_27 : f32 to vector<128x128xf32>
    %44 = arith.addf %43, %42 : vector<128x128xf32>
    %45 = tpu.reciprocal %44 {approx = true} : vector<128x128xf32> -> vector<128x128xf32>
    %c0_28 = arith.constant 0 : index
    %c0_29 = arith.constant 0 : index
    %46 = vector.load %arg10[%c0_28, %c0_29] : memref<128x128xf32, #tpu.memory_space<vmem>>, vector<128x128xf32>
    tpu.vector_store %arg10[%c0_28, %c0_29], %45 {strides = array<i32>} : memref<128x128xf32, #tpu.memory_space<vmem>>, vector<128x128xf32>,
    return
  }
  func.func @transform_0(%arg0: i32) -> (i32, i32) {
    %c0_i32 = arith.constant 0 : i32
    %c0_i32_0 = arith.constant 0 : i32
    return %arg0, %c0_i32 : i32, i32
  }
  func.func @transform_1(%arg0: i32) -> (i32, i32) {
    %c0_i32 = arith.constant 0 : i32
    %c0_i32_0 = arith.constant 0 : i32
    %c0_i32_1 = arith.constant 0 : i32
    return %c0_i32, %c0_i32_0 : i32, i32
  }
  func.func @transform_2(%arg0: i32) -> (i32, i32) {
    %c0_i32 = arith.constant 0 : i32
    %c0_i32_0 = arith.constant 0 : i32
    %c0_i32_1 = arith.constant 0 : i32
    return %c0_i32, %c0_i32_0 : i32, i32
  }
  func.func @transform_3(%arg0: i32) -> (i32, i32) {
    %c0_i32 = arith.constant 0 : i32
    %c0_i32_0 = arith.constant 0 : i32
    %c0_i32_1 = arith.constant 0 : i32
    return %c0_i32, %c0_i32_0 : i32, i32
  }
  func.func @transform_4(%arg0: i32) -> (i32, i32) {
    %c0_i32 = arith.constant 0 : i32
    %c0_i32_0 = arith.constant 0 : i32
    %c0_i32_1 = arith.constant 0 : i32
    return %c0_i32, %c0_i32_0 : i32, i32
  }
  func.func @transform_5(%arg0: i32) -> (i32, i32) {
    %c0_i32 = arith.constant 0 : i32
    %c0_i32_0 = arith.constant 0 : i32
    %c0_i32_1 = arith.constant 0 : i32
    return %c0_i32, %c0_i32_0 : i32, i32
  }
  func.func @transform_6(%arg0: i32) -> (i32, i32) {
    %c0_i32 = arith.constant 0 : i32
    %c0_i32_0 = arith.constant 0 : i32
    %c0_i32_1 = arith.constant 0 : i32
    return %c0_i32, %c0_i32_0 : i32, i32
  }
  func.func @transform_7(%arg0: i32) -> (i32, i32) {
    %c0_i32 = arith.constant 0 : i32
    %c0_i32_0 = arith.constant 0 : i32
    %c0_i32_1 = arith.constant 0 : i32
    return %c0_i32, %c0_i32_0 : i32, i32
  }
  func.func @transform_8(%arg0: i32) -> (i32, i32) {
    %c0_i32 = arith.constant 0 : i32
    %c0_i32_0 = arith.constant 0 : i32
    %c0_i32_1 = arith.constant 0 : i32
    return %c0_i32, %c0_i32_0 : i32, i32
  }
  func.func @transform_9(%arg0: i32) -> (i32, i32) {
    %c0_i32 = arith.constant 0 : i32
    %c0_i32_0 = arith.constant 0 : i32
    return %arg0, %c0_i32 : i32, i32
  }
}

</mosaic_0001>

<bundles_post_ra>
// kernel: tpu_custom_call.1
= control target key start
LH: loop header
LB: loop body
LE: loop exit
PB: predicated region body
PF: predicated region fallthrough
CT: control target
= control target key end

     0   :  { %14 = vsyncpa [#allocation3], 0  ;;  %s1723_s0 = inlined_call_operand.hbm [shape: f32[128,128], index: 0, kind: input, shape index: {}]   ;;  %s1724_s1 = inlined_call_operand.hbm [shape: bf16[128,128], index: 1, kind: input, shape index: {}]   ;;  %s1725_s2 = inlined_call_operand.vmem [shape: f32[1,128], index: 2, kind: input, shape index: {}]   ;;  %s1726_s3 = inlined_call_operand.hbm [shape: bf16[128,128], index: 3, kind: input, shape index: {}]   ;;  %s1727_s4 = inlined_call_operand.vmem [shape: f32[1,128], index: 4, kind: input, shape index: {}]   ;;  %s1728_s5 = inlined_call_operand.hbm [shape: bf16[128,128], index: 5, kind: input, shape index: {}]   ;;  %s1729_s6 = inlined_call_operand.vmem [shape: f32[1,128], index: 6, kind: input, shape index: {}]   ;;  %s1730_s7 = inlined_call_operand.hbm [shape: bf16[128,128], index: 7, kind: input, shape index: {}]   ;;  %s1731_s8 = inlined_call_operand.vmem [shape: f32[1,128], index: 8, kind: input, shape index: {}]   ;;  %s1732_s9 = inlined_call_operand.hbm [shape: f32[128,128], index: 9, kind: output, shape index: {}]  }
   0x1   :  { %15 = vsyncpa [#allocation6], 0 }
   0x2   :  { %16 = vsyncpa [#allocation9], 0 }
   0x3   :  { %17 = vsyncpa [#allocation4], 0  ;;  %s1543_s30 = smov [#allocation5]  }
   0x4   :  { %s35_s10 = sshll.u32 %s1543_s30, 4  ;;  %s36_s10 = int_to_ptr.vmem [resolvable:$true] %s35_s10 }
   0x5   :  { %s1423_s11 = scalar_lea.vmem %s36_s10, 1024  ;;  %p1428_p1 = scmp.lt.s32.totalorder %s36_s10, %s36_s10 }
   0x6   :  { %p1424_p0 = scmp.ne.s32.totalorder %s36_s10, %s1423_s11  ;;  %p1429_p2 = scmp.lt.s32.totalorder %s1423_s11, %s1423_s11 }
   0x8   :  { %p1430_p3 = por %p1429_p2, %p1428_p1 }
   0xa   :  { %p1431_p4 = pnand %p1430_p3, %p1424_p0 }
   0xc   :  { %1434 = shalt.err (!%p1431_p4)
}
   0xd   :  { %s1544_s12 = smov 64   ;;  %s1545_s13 = smov 4  }
   0xe   :  { %41 = dma.hbm_to_vmem [thread:$0]  %s1724_s1, 1024, %s36_s10, [#allocation6], %s1544_s12, %s1544_s12, %s1545_s13  }
   0xf   :  { %s1546_s16 = smov [#allocation8]   ;;  %s1547_s18 = smov [#allocation2]  }
  0x10   :  { %s63_s17 = sshll.u32 %s1546_s16, 4  ;;  %s23_s19 = sshll.u32 %s1547_s18, 4  ;;  %s64_s17 = int_to_ptr.vmem [resolvable:$true] %s63_s17  ;;  %s24_s19 = int_to_ptr.vmem [resolvable:$true] %s23_s19 }
  0x11   :  { %s1443_s20 = scalar_lea.vmem %s64_s17, 1024  ;;  %p1448_p6 = scmp.lt.s32.totalorder %s64_s17, %s64_s17 }
  0x12   :  { %p1444_p5 = scmp.ne.s32.totalorder %s64_s17, %s1443_s20  ;;  %p1449_p7 = scmp.lt.s32.totalorder %s1443_s20, %s1443_s20 }
  0x14   :  { %p1450_p8 = por %p1449_p7, %p1448_p6 }
  0x16   :  { %p1451_p9 = pnand %p1450_p8, %p1444_p5 }
  0x18   :  { %1454 = shalt.err (!%p1451_p9)
}
  0x19   :  { %69 = dma.hbm_to_vmem [thread:$0]  %s1728_s5, 1024, %s64_s17, [#allocation9], %s1544_s12, %s1544_s12, %s1545_s13  }
  0x1a   :  { %s1463_s1 = scalar_lea.vmem %s24_s19, 2048  ;;  %p1468_p11 = scmp.lt.s32.totalorder %s24_s19, %s24_s19 }
  0x1b   :  { %p1464_p10 = scmp.ne.s32.totalorder %s24_s19, %s1463_s1  ;;  %p1469_p12 = scmp.lt.s32.totalorder %s1463_s1, %s1463_s1 }
  0x1d   :  { %p1470_p13 = por %p1469_p12, %p1468_p11 }
  0x1f   :  { %p1471_p0 = pnand %p1470_p13, %p1464_p10 }
  0x21   :  { %1474 = shalt.err (!%p1471_p0)
}
  0x22   :  { %s1548_s23 = smov 128   ;;  %s1549_s24 = smov 8  }
  0x23   :  { %29 = dma.hbm_to_vmem [thread:$0]  %s1723_s0, 2048, %s24_s19, [#allocation3], %s1548_s23, %s1548_s23, %s1549_s24  }
  0x24   :  { %s1550_s27 = smov [#allocation7]   ;;  %s1551_s5 = smov [#allocation10]  }
  0x25   :  { %s49_s28 = sshll.u32 %s1550_s27, 4  ;;  %s77_s29 = sshll.u32 %s1551_s5, 4  ;;  %s50_s28 = int_to_ptr.vmem [resolvable:$true] %s49_s28  ;;  %s78_s29 = int_to_ptr.vmem [resolvable:$true] %s77_s29 }
  0x26   :  { %s1483_s30 = scalar_lea.vmem %s50_s28, 1024  ;;  %p1488_p2 = scmp.lt.s32.totalorder %s50_s28, %s50_s28 }
  0x27   :  { %p1484_p1 = scmp.ne.s32.totalorder %s50_s28, %s1483_s30  ;;  %p1489_p3 = scmp.lt.s32.totalorder %s1483_s30, %s1483_s30 }
  0x29   :  { %p1490_p4 = por %p1489_p3, %p1488_p2 }
  0x2b   :  { %p1491_p5 = pnand %p1490_p4, %p1484_p1 }
  0x2d   :  { %1494 = shalt.err (!%p1491_p5)
}
  0x2e   :  { %55 = dma.hbm_to_vmem [thread:$0]  %s1726_s3, 1024, %s50_s28, [#allocation6], %s1544_s12, %s1544_s12, %s1545_s13  }
  0x2f   :  { %s1503_s0 = scalar_lea.vmem %s78_s29, 1024  ;;  %p1508_p7 = scmp.lt.s32.totalorder %s78_s29, %s78_s29 }
  0x30   :  { %p1504_p6 = scmp.ne.s32.totalorder %s78_s29, %s1503_s0  ;;  %p1509_p8 = scmp.lt.s32.totalorder %s1503_s0, %s1503_s0 }
  0x32   :  { %p1510_p9 = por %p1509_p8, %p1508_p7 }
  0x34   :  { %p1511_p10 = pnand %p1510_p9, %p1504_p6 }
  0x36   :  { %1514 = shalt.err (!%p1511_p10)
}
  0x37   :  { %83 = dma.hbm_to_vmem [thread:$0]  %s1730_s7, 1024, %s78_s29, [#allocation9], %s1544_s12, %s1544_s12, %s1545_s13  }
  0x38   :  { %1535 = dma.done.wait [#allocation3], 2048  }
  0x39   :  { %1536 = vsyncadd [#allocation3], 4294965248 }
  0x3a   :  { %1537 = dma.done.wait [#allocation6], 2048  }
  0x3b   :  { %1538 = vsyncadd [#allocation6], 4294965248 }
  0x3c   :  { %1539 = dma.done.wait [#allocation9], 2048  }
  0x3d   :  { %1540 = vsyncadd [#allocation9], 4294965248  ;;  %v1319_v0 = vld [vmem:[#allocation5 + $0x38] sm:$0xff]   ;;  %v1320_v1 = vld [vmem:[#allocation5 + $0x30] sm:$0xff]  }
  0x3e   :  { %1181 = vmatprep.subr.bf16.mxu0 %v1319_v0  ;;  %v1321_v2 = vld [vmem:[#allocation5 + $0x28] sm:$0xff]   ;;  %v1322_v3 = vld [vmem:[#allocation5 + $0x20] sm:$0xff]   ;;  %v1323_v7 = vld [vmem:[#allocation5 + $0x18] sm:$0xff]  }
  0x3f   :  { %1182 = vmatpush3.bf16.msra.mxu0 %v1319_v0  ;;  %v102_v4 = vld [vmem:[#allocation2] sm:$0xff]  ;;  %v103_v5 = vld [vmem:[#allocation2 + $0x8] sm:$0xff]  ;;  %v1327_v8 = vld [vmem:[#allocation7 + $0x38] sm:$0xff]  }
  0x40   :  { %1183 = vmatprep.subr.bf16.mxu0 %v1320_v1  ;;  %v118_v6 = vpack.c.bf16 %v103_v5, %v102_v4  ;;  %v1328_v9 = vld [vmem:[#allocation7 + $0x30] sm:$0xff]   ;;  %1213 = vmatprep.subr.bf16.mxu1 %v1327_v8  ;;  %v1325_v11 = vld [vmem:[#allocation5 + $0x8] sm:$0xff]   ;;  %v1330_v13 = vld [vmem:[#allocation7 + $0x20] sm:$0xff]  }
  0x41   :  { %v1324_v10 = vld [vmem:[#allocation5 + $0x10] sm:$0xff]   ;;  %1214 = vmatpush3.bf16.msra.mxu1 %v1327_v8  ;;  %v1329_v12 = vld [vmem:[#allocation7 + $0x28] sm:$0xff]   ;;  %v1326_v14 = vld [vmem:[#allocation5] sm:$0xff]  }
  0x42   :  { %1197 = vmatprep.mubr.bf16.mxu0 %v118_v6  ;;  %1215 = vmatprep.subr.bf16.mxu1 %v1328_v9  ;;  %v1331_v15 = vld [vmem:[#allocation7 + $0x18] sm:$0xff]   ;;  %v104_v16 = vld [vmem:[#allocation2 + $0x10] sm:$0xff]  ;;  %v106_v18 = vld [vmem:[#allocation2 + $0x20] sm:$0xff] }
  0x43   :  { %1184 = vmatpush3.bf16.msra.mxu0 %v1320_v1  ;;  %v105_v17 = vld [vmem:[#allocation2 + $0x18] sm:$0xff]  ;;  %v107_v19 = vld [vmem:[#allocation2 + $0x28] sm:$0xff]  ;;  %v108_v22 = vld [vmem:[#allocation2 + $0x30] sm:$0xff] }
  0x44   :  { %1185 = vmatprep.subr.bf16.mxu0 %v1321_v2  ;;  %v119_v20 = vpack.c.bf16 %v105_v17, %v104_v16  ;;  %v120_v21 = vpack.c.bf16 %v107_v19, %v106_v18  ;;  %v109_v23 = vld [vmem:[#allocation2 + $0x38] sm:$0xff]  ;;  %v110_v24 = vld [vmem:[#allocation2 + $0x40] sm:$0xff]  ;;  %v111_v25 = vld [vmem:[#allocation2 + $0x48] sm:$0xff] }
  0x45   :  { %1216 = vmatpush3.bf16.msra.mxu1 %v1328_v9  ;;  %v121_v26 = vpack.c.bf16 %v109_v23, %v108_v22  ;;  %v122_v27 = vpack.c.bf16 %v111_v25, %v110_v24  ;;  %v112_v28 = vld [vmem:[#allocation2 + $0x50] sm:$0xff]  ;;  %v113_v29 = vld [vmem:[#allocation2 + $0x58] sm:$0xff]  ;;  %v114_v30 = vld [vmem:[#allocation2 + $0x60] sm:$0xff] }
  0x46   :  { %1217 = vmatprep.subr.bf16.mxu1 %v1329_v12  ;;  %v115_v31 = vld [vmem:[#allocation2 + $0x68] sm:$0xff]  ;;  %v123_v32 = vpack.c.bf16 %v113_v29, %v112_v28  ;;  %v116_v34 = vld [vmem:[#allocation2 + $0x70] sm:$0xff]  ;;  %v117_v35 = vld [vmem:[#allocation2 + $0x78] sm:$0xff] }
  0x47   :  { %1186 = vmatpush3.bf16.msra.mxu0 %v1321_v2  ;;  %v124_v33 = vpack.c.bf16 %v115_v31, %v114_v30  ;;  %v125_v36 = vpack.c.bf16 %v117_v35, %v116_v34  ;;  %v1332_v37 = vld [vmem:[#allocation7 + $0x10] sm:$0xff]   ;;  %v1333_v38 = vld [vmem:[#allocation7 + $0x8] sm:$0xff]   ;;  %v1334_v39 = vld [vmem:[#allocation7] sm:$0xff]  }
  0x48   :  { %1187 = vmatprep.subr.bf16.mxu0 %v1322_v3  ;;  %v1335_v40 = vld [vmem:[#allocation8 + $0x38] sm:$0xff]   ;;  %v1336_v41 = vld [vmem:[#allocation8 + $0x30] sm:$0xff]   ;;  %v1337_v42 = vld [vmem:[#allocation8 + $0x28] sm:$0xff]  }
  0x49   :  { %1218 = vmatpush3.bf16.msra.mxu1 %v1329_v12  ;;  %v1338_v43 = vld [vmem:[#allocation8 + $0x20] sm:$0xff]   ;;  %v1339_v44 = vld [vmem:[#allocation8 + $0x18] sm:$0xff]  }
  0x4a   :  { %1219 = vmatprep.subr.bf16.mxu1 %v1330_v13  ;;  %v1636_v46 = vld [vmem:[%s1725_s2] ss:$0 sm:$0xff] }
  0x4b   :  { %1188 = vmatpush3.bf16.msra.mxu0 %v1322_v3 }
  0x4c   :  { %1189 = vmatprep.subr.bf16.mxu0 %v1323_v7 }
  0x4d   :  { %1220 = vmatpush3.bf16.msra.mxu1 %v1330_v13 }
  0x4e   :  { %1221 = vmatprep.subr.bf16.mxu1 %v1331_v15 }
  0x4f   :  { %1190 = vmatpush3.bf16.msra.mxu0 %v1323_v7 }
  0x50   :  { %1191 = vmatprep.subr.bf16.mxu0 %v1324_v10 }
  0x51   :  { %1222 = vmatpush3.bf16.msra.mxu1 %v1331_v15 }
  0x52   :  { %1223 = vmatprep.subr.bf16.mxu1 %v1332_v37 }
  0x53   :  { %1192 = vmatpush3.bf16.msra.mxu0 %v1324_v10 }
  0x54   :  { %1193 = vmatprep.subr.bf16.mxu0 %v1325_v11 }
  0x55   :  { %1224 = vmatpush3.bf16.msra.mxu1 %v1332_v37 }
  0x56   :  { %1225 = vmatprep.subr.bf16.mxu1 %v1333_v38 }
  0x57   :  { %1194 = vmatpush3.bf16.msra.mxu0 %v1325_v11 }
  0x58   :  { %1195 = vmatprep.subr.bf16.mxu0 %v1326_v14 }
  0x59   :  { %1226 = vmatpush3.bf16.msra.mxu1 %v1333_v38 }
  0x5a   :  { %1227 = vmatprep.subr.bf16.mxu1 %v1334_v39 }
  0x5b   :  { %1196 = vmatpush3.bf16.msra.mxu0 %v1326_v14 }
  0x5c   :  { %1245 = vmatprep.subr.bf16.mxu0 %v1335_v40 }
  0x5d   :  { %1228 = vmatpush3.bf16.msra.mxu1 %v1334_v39 }
  0x5e   :  { %1198 = vmatmul.mubr.bf16.vlgmr.msra.gmra.mxu0 %v119_v20 }
  0x5f   :  { %1201 = vmatprep.mubr.bf16.mxu0 %v120_v21  ;;  %1246 = vmatpush3.bf16.msra.mxu0 %v1335_v40 }
  0x60   :  { %1247 = vmatprep.subr.bf16.mxu0 %v1336_v41 }
  0x63   :  { %1248 = vmatpush3.bf16.msra.mxu0 %v1336_v41 }
  0x64   :  { %1249 = vmatprep.subr.bf16.mxu0 %v1337_v42 }
  0x66   :  { %1202 = vmatmul.mubr.bf16.gmra.mxu0 %v121_v26 }
  0x67   :  { %1205 = vmatprep.mubr.bf16.mxu0 %v122_v27  ;;  %1250 = vmatpush3.bf16.msra.mxu0 %v1337_v42 }
  0x68   :  { %1251 = vmatprep.subr.bf16.mxu0 %v1338_v43 }
  0x6b   :  { %1252 = vmatpush3.bf16.msra.mxu0 %v1338_v43 }
  0x6c   :  { %1253 = vmatprep.subr.bf16.mxu0 %v1339_v44 }
  0x6e   :  { %1206 = vmatmul.mubr.bf16.gmra.mxu0 %v123_v32 }
  0x6f   :  { %1209 = vmatprep.mubr.bf16.mxu0 %v124_v33  ;;  %1254 = vmatpush3.bf16.msra.mxu0 %v1339_v44 }
  0x76   :  { %1210 = vmatmul.mubr.bf16.gmra.mxu0 %v125_v36 }
 0x11e   :  { %v1199_v45 = vpop.f32.mrf.mxu0 }
 0x11f   :  { %v240_v49 = vadd.f32 %v1199_v45, %v1636_v46 }
 0x120   :  { %v231_v47 = vpop.f32.mrf.mxu0 }
 0x121   :  { %v232_v48 = vadd.f32 %v1636_v46, %v231_v47  ;;  %v312_v56 = vmul.f32 0.01, %v240_v49  ;;  %vm296_vm2 = vcmp.gt.f32.partialorder %v240_v49, 0.0 }
 0x122   :  { %v1200_v50 = vpop.f32.mrf.mxu0 }
 0x123   :  { %v243_v51 = vadd.f32 %v1200_v50, %v1636_v46  ;;  %v310_v53 = vmul.f32 0.01, %v232_v48  ;;  %vm294_vm1 = vcmp.gt.f32.partialorder %v232_v48, 0.0  ;;  %v328_v3 = vsel %vm296_vm2, %v240_v49, %v312_v56  ;;  %v1341_v56 = vld [vmem:[#allocation8 + $0x8] sm:$0xff]  }
 0x124   :  { %v234_v52 = vpop.f32.mrf.mxu0 }
 0x125   :  { %vm297_vm0 = vcmp.gt.f32.partialorder %v243_v51, 0.0  ;;  %v313_v54 = vmul.f32 0.01, %v243_v51  ;;  %v235_v55 = vadd.f32 %v1636_v46, %v234_v52  ;;  %v326_v62 = vsel %vm294_vm1, %v232_v48, %v310_v53 }
 0x126   :  { %v1203_v57 = vpop.f32.mrf.mxu0 }
 0x127   :  { %v311_v58 = vmul.f32 0.01, %v235_v55  ;;  %vm295_vm3 = vcmp.gt.f32.partialorder %v235_v55, 0.0  ;;  %v329_v60 = vsel %vm297_vm0, %v243_v51, %v313_v54  ;;  %v256_v0 = vadd.f32 %v1203_v57, %v1636_v46  ;;  %v1343_v57 = vld [vmem:[#allocation10 + $0x38] sm:$0xff]  }
 0x128   :  { %v247_v59 = vpop.f32.mrf.mxu0  ;;  %v343_v5 = vpack.c.bf16 %v329_v60, %v328_v3  ;;  %1277 = vmatprep.subr.bf16.mxu1 %v1343_v57  ;;  %v1346_v60 = vld [vmem:[#allocation10 + $0x20] sm:$0xff]  }
 0x129   :  { %v248_v61 = vadd.f32 %v1636_v46, %v247_v59  ;;  %v327_v63 = vsel %vm295_vm3, %v235_v55, %v311_v58  ;;  %v316_v10 = vmul.f32 0.01, %v256_v0  ;;  %vm300_vm6 = vcmp.gt.f32.partialorder %v256_v0, 0.0  ;;  %v1340_v55 = vld [vmem:[#allocation8 + $0x10] sm:$0xff]   ;;  %v1345_v59 = vld [vmem:[#allocation10 + $0x28] sm:$0xff]  }
 0x12a   :  { %v1204_v1 = vpop.f32.mrf.mxu0  ;;  %v342_v2 = vpack.c.bf16 %v327_v63, %v326_v62  ;;  %1255 = vmatprep.subr.bf16.mxu0 %v1340_v55  ;;  %v1344_v58 = vld [vmem:[#allocation10 + $0x30] sm:$0xff]   ;;  %v1657_v63 = vld [vmem:[%s1727_s4] ss:$0 sm:$0xff] }
 0x12b   :  { %v259_v4 = vadd.f32 %v1204_v1, %v1636_v46  ;;  %v314_v7 = vmul.f32 0.01, %v248_v61  ;;  %vm298_vm5 = vcmp.gt.f32.partialorder %v248_v61, 0.0  ;;  %v332_v21 = vsel %vm300_vm6, %v256_v0, %v316_v10  ;;  %1256 = vmatpush3.bf16.msra.mxu0 %v1340_v55 }
 0x12c   :  { %v250_v6 = vpop.f32.mrf.mxu0  ;;  %1229 = vmatprep.mubr.bf16.mxu1 %v342_v2  ;;  %1257 = vmatprep.subr.bf16.mxu0 %v1341_v56 }
 0x12d   :  { %vm301_vm4 = vcmp.gt.f32.partialorder %v259_v4, 0.0  ;;  %v317_v8 = vmul.f32 0.01, %v259_v4  ;;  %v251_v9 = vadd.f32 %v1636_v46, %v250_v6  ;;  %1230 = vmatmul.mubr.bf16.vlgmr.msra.gmra.mxu1 %v343_v5  ;;  %v330_v16 = vsel %vm298_vm5, %v248_v61, %v314_v7  ;;  %v1347_v61 = vld [vmem:[#allocation10 + $0x18] sm:$0xff]  }
 0x12e   :  { %v1207_v11 = vpop.f32.mrf.mxu0  ;;  %1278 = vmatpush3.bf16.msra.mxu1 %v1343_v57 }
 0x12f   :  { %vm299_vm7 = vcmp.gt.f32.partialorder %v251_v9, 0.0  ;;  %v315_v12 = vmul.f32 0.01, %v251_v9  ;;  %v333_v14 = vsel %vm301_vm4, %v259_v4, %v317_v8  ;;  %v272_v18 = vadd.f32 %v1207_v11, %v1636_v46  ;;  %1258 = vmatpush3.bf16.msra.mxu0 %v1341_v56  ;;  %1279 = vmatprep.subr.bf16.mxu1 %v1344_v58 }
 0x130   :  { %v263_v13 = vpop.f32.mrf.mxu0  ;;  %v345_v23 = vpack.c.bf16 %v333_v14, %v332_v21 }
 0x131   :  { %v264_v15 = vadd.f32 %v1636_v46, %v263_v13  ;;  %v331_v17 = vsel %vm299_vm7, %v251_v9, %v315_v12  ;;  %v320_v28 = vmul.f32 0.01, %v272_v18  ;;  %vm304_vm10 = vcmp.gt.f32.partialorder %v272_v18, 0.0 }
 0x132   :  { %v1208_v19 = vpop.f32.mrf.mxu0  ;;  %v344_v20 = vpack.c.bf16 %v331_v17, %v330_v16  ;;  %1280 = vmatpush3.bf16.msra.mxu1 %v1344_v58 }
 0x133   :  { %v275_v22 = vadd.f32 %v1208_v19, %v1636_v46  ;;  %v318_v25 = vmul.f32 0.01, %v264_v15  ;;  %vm302_vm9 = vcmp.gt.f32.partialorder %v264_v15, 0.0  ;;  %v336_v39 = vsel %vm304_vm10, %v272_v18, %v320_v28  ;;  %1281 = vmatprep.subr.bf16.mxu1 %v1345_v59 }
 0x134   :  { %v266_v24 = vpop.f32.mrf.mxu0  ;;  %1233 = vmatprep.mubr.bf16.mxu1 %v344_v20 }
 0x135   :  { %vm305_vm8 = vcmp.gt.f32.partialorder %v275_v22, 0.0  ;;  %v321_v26 = vmul.f32 0.01, %v275_v22  ;;  %v267_v27 = vadd.f32 %v1636_v46, %v266_v24  ;;  %1234 = vmatmul.mubr.bf16.gmra.mxu1 %v345_v23  ;;  %v334_v34 = vsel %vm302_vm9, %v264_v15, %v318_v25 }
 0x136   :  { %v1211_v29 = vpop.f32.mrf.mxu0  ;;  %1282 = vmatpush3.bf16.msra.mxu1 %v1345_v59 }
 0x137   :  { %vm303_vm11 = vcmp.gt.f32.partialorder %v267_v27, 0.0  ;;  %v319_v30 = vmul.f32 0.01, %v267_v27  ;;  %v337_v32 = vsel %vm305_vm8, %v275_v22, %v321_v26  ;;  %v288_v36 = vadd.f32 %v1211_v29, %v1636_v46  ;;  %1283 = vmatprep.subr.bf16.mxu1 %v1346_v60 }
 0x138   :  { %v279_v31 = vpop.f32.mrf.mxu0  ;;  %v347_v41 = vpack.c.bf16 %v337_v32, %v336_v39 }
 0x139   :  { %v280_v33 = vadd.f32 %v1636_v46, %v279_v31  ;;  %v335_v35 = vsel %vm303_vm11, %v267_v27, %v319_v30  ;;  %v324_v47 = vmul.f32 0.01, %v288_v36  ;;  %vm308_vm14 = vcmp.gt.f32.partialorder %v288_v36, 0.0 }
 0x13a   :  { %v1212_v37 = vpop.f32.mrf.mxu0  ;;  %v346_v38 = vpack.c.bf16 %v335_v35, %v334_v34  ;;  %1284 = vmatpush3.bf16.msra.mxu1 %v1346_v60 }
 0x13b   :  { %v291_v40 = vadd.f32 %v1212_v37, %v1636_v46  ;;  %v322_v43 = vmul.f32 0.01, %v280_v33  ;;  %vm306_vm13 = vcmp.gt.f32.partialorder %v280_v33, 0.0  ;;  %v340_v53 = vsel %vm308_vm14, %v288_v36, %v324_v47  ;;  %1285 = vmatprep.subr.bf16.mxu1 %v1347_v61 }
 0x13c   :  { %v282_v42 = vpop.f32.mrf.mxu0  ;;  %1237 = vmatprep.mubr.bf16.mxu1 %v346_v38 }
 0x13d   :  { %vm309_vm12 = vcmp.gt.f32.partialorder %v291_v40, 0.0  ;;  %v325_v44 = vmul.f32 0.01, %v291_v40  ;;  %v283_v45 = vadd.f32 %v1636_v46, %v282_v42  ;;  %1238 = vmatmul.mubr.bf16.gmra.mxu1 %v347_v41  ;;  %v338_v50 = vsel %vm306_vm13, %v280_v33, %v322_v43  ;;  %v1342_v46 = vld [vmem:[#allocation8] sm:$0xff]  }
 0x13e   :  { %1259 = vmatprep.subr.bf16.mxu0 %v1342_v46  ;;  %1286 = vmatpush3.bf16.msra.mxu1 %v1347_v61 }
 0x13f   :  { %vm307_vm15 = vcmp.gt.f32.partialorder %v283_v45, 0.0  ;;  %v323_v48 = vmul.f32 0.01, %v283_v45  ;;  %v341_v49 = vsel %vm309_vm12, %v291_v40, %v325_v44  ;;  %1260 = vmatpush3.bf16.msra.mxu0 %v1342_v46 }
 0x140   :  { %v349_v54 = vpack.c.bf16 %v341_v49, %v340_v53 }
 0x141   :  { %v339_v51 = vsel %vm307_vm15, %v283_v45, %v323_v48 }
 0x142   :  { %v348_v52 = vpack.c.bf16 %v339_v51, %v338_v50 }
 0x144   :  { %1241 = vmatprep.mubr.bf16.mxu1 %v348_v52 }
 0x145   :  { %1242 = vmatmul.mubr.bf16.gmra.mxu1 %v349_v54 }
 0x1ed   :  { %v1231_v62 = vpop.f32.mrf.mxu1 }
 0x1ee   :  { %v464_v2 = vadd.f32 %v1231_v62, %v1657_v63 }
 0x1ef   :  { %v455_v0 = vpop.f32.mrf.mxu1 }
 0x1f0   :  { %v456_v1 = vadd.f32 %v1657_v63, %v455_v0  ;;  %v536_v9 = vmul.f32 0.01, %v464_v2  ;;  %vm520_vm2 = vcmp.gt.f32.partialorder %v464_v2, 0.0 }
 0x1f1   :  { %v1232_v3 = vpop.f32.mrf.mxu1 }
 0x1f2   :  { %v467_v4 = vadd.f32 %v1232_v3, %v1657_v63  ;;  %v534_v6 = vmul.f32 0.01, %v456_v1  ;;  %vm518_vm1 = vcmp.gt.f32.partialorder %v456_v1, 0.0  ;;  %v552_v17 = vsel %vm520_vm2, %v464_v2, %v536_v9  ;;  %v1349_v9 = vld [vmem:[#allocation10 + $0x8] sm:$0xff]  }
 0x1f3   :  { %v458_v5 = vpop.f32.mrf.mxu1 }
 0x1f4   :  { %vm521_vm0 = vcmp.gt.f32.partialorder %v467_v4, 0.0  ;;  %v537_v7 = vmul.f32 0.01, %v467_v4  ;;  %v459_v8 = vadd.f32 %v1657_v63, %v458_v5  ;;  %v550_v15 = vsel %vm518_vm1, %v456_v1, %v534_v6 }
 0x1f5   :  { %v1235_v10 = vpop.f32.mrf.mxu1 }
 0x1f6   :  { %vm519_vm3 = vcmp.gt.f32.partialorder %v459_v8, 0.0  ;;  %v535_v11 = vmul.f32 0.01, %v459_v8  ;;  %v553_v12 = vsel %vm521_vm0, %v467_v4, %v537_v7  ;;  %v480_v18 = vadd.f32 %v1235_v10, %v1657_v63 }
 0x1f7   :  { %v471_v13 = vpop.f32.mrf.mxu1  ;;  %v567_v21 = vpack.c.bf16 %v553_v12, %v552_v17 }
 0x1f8   :  { %v472_v14 = vadd.f32 %v1657_v63, %v471_v13  ;;  %v551_v16 = vsel %vm519_vm3, %v459_v8, %v535_v11  ;;  %v540_v27 = vmul.f32 0.01, %v480_v18  ;;  %vm524_vm6 = vcmp.gt.f32.partialorder %v480_v18, 0.0  ;;  %v1348_v8 = vld [vmem:[#allocation10 + $0x10] sm:$0xff]   ;;  %v1678_v11 = vld [vmem:[%s1729_s6] ss:$0 sm:$0xff] }
 0x1f9   :  { %v1236_v19 = vpop.f32.mrf.mxu1  ;;  %v566_v20 = vpack.c.bf16 %v551_v16, %v550_v15  ;;  %1287 = vmatprep.subr.bf16.mxu1 %v1348_v8 }
 0x1fa   :  { %v483_v22 = vadd.f32 %v1236_v19, %v1657_v63  ;;  %v538_v24 = vmul.f32 0.01, %v472_v14  ;;  %vm522_vm5 = vcmp.gt.f32.partialorder %v472_v14, 0.0  ;;  %v556_v38 = vsel %vm524_vm6, %v480_v18, %v540_v27  ;;  %1288 = vmatpush3.bf16.msra.mxu1 %v1348_v8 }
 0x1fb   :  { %v474_v23 = vpop.f32.mrf.mxu1  ;;  %1261 = vmatprep.mubr.bf16.mxu0 %v566_v20  ;;  %1289 = vmatprep.subr.bf16.mxu1 %v1349_v9 }
 0x1fc   :  { %vm525_vm4 = vcmp.gt.f32.partialorder %v483_v22, 0.0  ;;  %v541_v25 = vmul.f32 0.01, %v483_v22  ;;  %v475_v26 = vadd.f32 %v1657_v63, %v474_v23  ;;  %1262 = vmatmul.mubr.bf16.vlgmr.msra.gmra.mxu0 %v567_v21  ;;  %v554_v33 = vsel %vm522_vm5, %v472_v14, %v538_v24 }
 0x1fd   :  { %v1239_v28 = vpop.f32.mrf.mxu1 }
 0x1fe   :  { %vm523_vm7 = vcmp.gt.f32.partialorder %v475_v26, 0.0  ;;  %v539_v29 = vmul.f32 0.01, %v475_v26  ;;  %v557_v31 = vsel %vm525_vm4, %v483_v22, %v541_v25  ;;  %v496_v35 = vadd.f32 %v1239_v28, %v1657_v63  ;;  %1290 = vmatpush3.bf16.msra.mxu1 %v1349_v9 }
 0x1ff   :  { %v487_v30 = vpop.f32.mrf.mxu1  ;;  %v569_v40 = vpack.c.bf16 %v557_v31, %v556_v38 }
 0x200   :  { %v488_v32 = vadd.f32 %v1657_v63, %v487_v30  ;;  %v555_v34 = vsel %vm523_vm7, %v475_v26, %v539_v29  ;;  %v544_v45 = vmul.f32 0.01, %v496_v35  ;;  %vm528_vm10 = vcmp.gt.f32.partialorder %v496_v35, 0.0 }
 0x201   :  { %v1240_v36 = vpop.f32.mrf.mxu1  ;;  %v568_v37 = vpack.c.bf16 %v555_v34, %v554_v33 }
 0x202   :  { %v499_v39 = vadd.f32 %v1240_v36, %v1657_v63  ;;  %v542_v42 = vmul.f32 0.01, %v488_v32  ;;  %vm526_vm9 = vcmp.gt.f32.partialorder %v488_v32, 0.0  ;;  %v560_v46 = vsel %vm528_vm10, %v496_v35, %v544_v45 }
 0x203   :  { %v490_v41 = vpop.f32.mrf.mxu1  ;;  %1265 = vmatprep.mubr.bf16.mxu0 %v568_v37 }
 0x204   :  { %vm529_vm8 = vcmp.gt.f32.partialorder %v499_v39, 0.0  ;;  %v545_v43 = vmul.f32 0.01, %v499_v39  ;;  %v491_v44 = vadd.f32 %v1657_v63, %v490_v41  ;;  %1266 = vmatmul.mubr.bf16.gmra.mxu0 %v569_v40  ;;  %v558_v52 = vsel %vm526_vm9, %v488_v32, %v542_v42 }
 0x205   :  { %v1243_v47 = vpop.f32.mrf.mxu1 }
 0x206   :  { %vm527_vm11 = vcmp.gt.f32.partialorder %v491_v44, 0.0  ;;  %v543_v48 = vmul.f32 0.01, %v491_v44  ;;  %v561_v50 = vsel %vm529_vm8, %v499_v39, %v545_v43  ;;  %v512_v54 = vadd.f32 %v1243_v47, %v1657_v63 }
 0x207   :  { %v503_v49 = vpop.f32.mrf.mxu1  ;;  %v571_v58 = vpack.c.bf16 %v561_v50, %v560_v46 }
 0x208   :  { %v504_v51 = vadd.f32 %v1657_v63, %v503_v49  ;;  %v559_v53 = vsel %vm527_vm11, %v491_v44, %v543_v48  ;;  %v548_v0 = vmul.f32 0.01, %v512_v54  ;;  %vm532_vm14 = vcmp.gt.f32.partialorder %v512_v54, 0.0 }
 0x209   :  { %v1244_v55 = vpop.f32.mrf.mxu1  ;;  %v570_v56 = vpack.c.bf16 %v559_v53, %v558_v52 }
 0x20a   :  { %v515_v57 = vadd.f32 %v1244_v55, %v1657_v63  ;;  %v546_v60 = vmul.f32 0.01, %v504_v51  ;;  %vm530_vm13 = vcmp.gt.f32.partialorder %v504_v51, 0.0  ;;  %v564_v6 = vsel %vm532_vm14, %v512_v54, %v548_v0 }
 0x20b   :  { %v506_v59 = vpop.f32.mrf.mxu1  ;;  %1269 = vmatprep.mubr.bf16.mxu0 %v570_v56 }
 0x20c   :  { %vm533_vm12 = vcmp.gt.f32.partialorder %v515_v57, 0.0  ;;  %v549_v61 = vmul.f32 0.01, %v515_v57  ;;  %v507_v62 = vadd.f32 %v1657_v63, %v506_v59  ;;  %1270 = vmatmul.mubr.bf16.gmra.mxu0 %v571_v58  ;;  %v562_v3 = vsel %vm530_vm13, %v504_v51, %v546_v60  ;;  %v1350_v63 = vld [vmem:[#allocation10] sm:$0xff]  }
 0x20d   :  { %1291 = vmatprep.subr.bf16.mxu1 %v1350_v63 }
 0x20e   :  { %vm531_vm15 = vcmp.gt.f32.partialorder %v507_v62, 0.0  ;;  %v547_v1 = vmul.f32 0.01, %v507_v62  ;;  %v565_v2 = vsel %vm533_vm12, %v515_v57, %v549_v61  ;;  %1292 = vmatpush3.bf16.msra.mxu1 %v1350_v63 }
 0x20f   :  { %v573_v7 = vpack.c.bf16 %v565_v2, %v564_v6 }
 0x210   :  { %v563_v4 = vsel %vm531_vm15, %v507_v62, %v547_v1 }
 0x211   :  { %v572_v5 = vpack.c.bf16 %v563_v4, %v562_v3 }
 0x213   :  { %1273 = vmatprep.mubr.bf16.mxu0 %v572_v5 }
 0x214   :  { %1274 = vmatmul.mubr.bf16.gmra.mxu0 %v573_v7 }
 0x2bc   :  { %v1263_v10 = vpop.f32.mrf.mxu0 }
 0x2bd   :  { %v688_v14 = vadd.f32 %v1263_v10, %v1678_v11 }
 0x2be   :  { %v679_v12 = vpop.f32.mrf.mxu0 }
 0x2bf   :  { %v680_v13 = vadd.f32 %v1678_v11, %v679_v12  ;;  %v760_v21 = vmul.f32 0.01, %v688_v14  ;;  %vm744_vm2 = vcmp.gt.f32.partialorder %v688_v14, 0.0 }
 0x2c0   :  { %v1264_v15 = vpop.f32.mrf.mxu0 }
 0x2c1   :  { %v691_v16 = vadd.f32 %v1264_v15, %v1678_v11  ;;  %v758_v18 = vmul.f32 0.01, %v680_v13  ;;  %vm742_vm1 = vcmp.gt.f32.partialorder %v680_v13, 0.0  ;;  %v776_v29 = vsel %vm744_vm2, %v688_v14, %v760_v21 }
 0x2c2   :  { %v682_v17 = vpop.f32.mrf.mxu0 }
 0x2c3   :  { %vm745_vm0 = vcmp.gt.f32.partialorder %v691_v16, 0.0  ;;  %v761_v19 = vmul.f32 0.01, %v691_v16  ;;  %v683_v20 = vadd.f32 %v1678_v11, %v682_v17  ;;  %v774_v27 = vsel %vm742_vm1, %v680_v13, %v758_v18 }
 0x2c4   :  { %v1267_v22 = vpop.f32.mrf.mxu0 }
 0x2c5   :  { %vm743_vm3 = vcmp.gt.f32.partialorder %v683_v20, 0.0  ;;  %v759_v23 = vmul.f32 0.01, %v683_v20  ;;  %v777_v24 = vsel %vm745_vm0, %v691_v16, %v761_v19  ;;  %v704_v30 = vadd.f32 %v1267_v22, %v1678_v11 }
 0x2c6   :  { %v695_v25 = vpop.f32.mrf.mxu0  ;;  %v791_v33 = vpack.c.bf16 %v777_v24, %v776_v29 }
 0x2c7   :  { %v696_v26 = vadd.f32 %v1678_v11, %v695_v25  ;;  %v775_v28 = vsel %vm743_vm3, %v683_v20, %v759_v23  ;;  %v764_v39 = vmul.f32 0.01, %v704_v30  ;;  %vm748_vm6 = vcmp.gt.f32.partialorder %v704_v30, 0.0  ;;  %v1699_v20 = vld [vmem:[%s1731_s8] ss:$0 sm:$0xff]  ;;  %s1552_s8 = smov [#allocation11]  }
 0x2c8   :  { %v1268_v31 = vpop.f32.mrf.mxu0  ;;  %v790_v32 = vpack.c.bf16 %v775_v28, %v774_v27  ;;  %s1067_s17 = sshll.u32 %s1552_s8, 4  ;;  %s1068_s17 = int_to_ptr.vmem [resolvable:$true] %s1067_s17 }
 0x2c9   :  { %v707_v34 = vadd.f32 %v1268_v31, %v1678_v11  ;;  %v762_v36 = vmul.f32 0.01, %v696_v26  ;;  %vm746_vm5 = vcmp.gt.f32.partialorder %v696_v26, 0.0  ;;  %v780_v51 = vsel %vm748_vm6, %v704_v30, %v764_v39  ;;  %s1515_s18 = scalar_lea.vmem %s1068_s17, 2048  ;;  %p1520_p12 = scmp.lt.s32.totalorder %s1068_s17, %s1068_s17 }
 0x2ca   :  { %v698_v35 = vpop.f32.mrf.mxu0  ;;  %1293 = vmatprep.mubr.bf16.mxu1 %v790_v32  ;;  %p1516_p11 = scmp.ne.s32.totalorder %s1068_s17, %s1515_s18  ;;  %p1521_p13 = scmp.lt.s32.totalorder %s1515_s18, %s1515_s18 }
 0x2cb   :  { %vm749_vm4 = vcmp.gt.f32.partialorder %v707_v34, 0.0  ;;  %v765_v37 = vmul.f32 0.01, %v707_v34  ;;  %v699_v38 = vadd.f32 %v1678_v11, %v698_v35  ;;  %1294 = vmatmul.mubr.bf16.vlgmr.msra.gmra.mxu1 %v791_v33  ;;  %v778_v45 = vsel %vm746_vm5, %v696_v26, %v762_v36 }
 0x2cc   :  { %v1271_v40 = vpop.f32.mrf.mxu0  ;;  %p1522_p0 = por %p1521_p13, %p1520_p12 }
 0x2cd   :  { %vm747_vm7 = vcmp.gt.f32.partialorder %v699_v38, 0.0  ;;  %v763_v41 = vmul.f32 0.01, %v699_v38  ;;  %v781_v43 = vsel %vm749_vm4, %v707_v34, %v765_v37  ;;  %v720_v48 = vadd.f32 %v1271_v40, %v1678_v11 }
 0x2ce   :  { %v711_v42 = vpop.f32.mrf.mxu0  ;;  %v793_v53 = vpack.c.bf16 %v781_v43, %v780_v51  ;;  %p1523_p1 = pnand %p1522_p0, %p1516_p11 }
 0x2cf   :  { %v712_v44 = vadd.f32 %v1678_v11, %v711_v42  ;;  %v779_v47 = vsel %vm747_vm7, %v699_v38, %v763_v41  ;;  %v768_v57 = vmul.f32 0.01, %v720_v48  ;;  %vm752_vm10 = vcmp.gt.f32.partialorder %v720_v48, 0.0 }
 0x2d0   :  { %v1272_v49 = vpop.f32.mrf.mxu0  ;;  %v792_v50 = vpack.c.bf16 %v779_v47, %v778_v45 }
 0x2d1   :  { %v723_v52 = vadd.f32 %v1272_v49, %v1678_v11  ;;  %v766_v55 = vmul.f32 0.01, %v712_v44  ;;  %vm750_vm9 = vcmp.gt.f32.partialorder %v712_v44, 0.0  ;;  %v784_v5 = vsel %vm752_vm10, %v720_v48, %v768_v57 }
 0x2d2   :  { %v714_v54 = vpop.f32.mrf.mxu0  ;;  %1297 = vmatprep.mubr.bf16.mxu1 %v792_v50 }
 0x2d3   :  { %vm753_vm8 = vcmp.gt.f32.partialorder %v723_v52, 0.0  ;;  %v769_v56 = vmul.f32 0.01, %v723_v52  ;;  %v715_v46 = vadd.f32 %v1678_v11, %v714_v54  ;;  %1298 = vmatmul.mubr.bf16.gmra.mxu1 %v793_v53  ;;  %v782_v0 = vsel %vm750_vm9, %v712_v44, %v766_v55 }
 0x2d4   :  { %v1275_v58 = vpop.f32.mrf.mxu0 }
 0x2d5   :  { %vm751_vm11 = vcmp.gt.f32.partialorder %v715_v46, 0.0  ;;  %v767_v59 = vmul.f32 0.01, %v715_v46  ;;  %v785_v61 = vsel %vm753_vm8, %v723_v52, %v769_v56  ;;  %v736_v2 = vadd.f32 %v1275_v58, %v1678_v11 }
 0x2d6   :  { %v727_v60 = vpop.f32.mrf.mxu0  ;;  %v795_v7 = vpack.c.bf16 %v785_v61, %v784_v5 }
 0x2d7   :  { %v728_v62 = vadd.f32 %v1678_v11, %v727_v60  ;;  %v783_v1 = vsel %vm751_vm11, %v715_v46, %v767_v59  ;;  %v772_v12 = vmul.f32 0.01, %v736_v2  ;;  %vm756_vm14 = vcmp.gt.f32.partialorder %v736_v2, 0.0 }
 0x2d8   :  { %v1276_v3 = vpop.f32.mrf.mxu0  ;;  %v794_v4 = vpack.c.bf16 %v783_v1, %v782_v0 }
 0x2d9   :  { %v739_v6 = vadd.f32 %v1276_v3, %v1678_v11  ;;  %v770_v9 = vmul.f32 0.01, %v728_v62  ;;  %vm754_vm13 = vcmp.gt.f32.partialorder %v728_v62, 0.0  ;;  %v788_v18 = vsel %vm756_vm14, %v736_v2, %v772_v12 }
 0x2da   :  { %v730_v8 = vpop.f32.mrf.mxu0  ;;  %1301 = vmatprep.mubr.bf16.mxu1 %v794_v4 }
 0x2db   :  { %vm757_vm12 = vcmp.gt.f32.partialorder %v739_v6, 0.0  ;;  %v773_v63 = vmul.f32 0.01, %v739_v6  ;;  %v731_v10 = vadd.f32 %v1678_v11, %v730_v8  ;;  %1302 = vmatmul.mubr.bf16.gmra.mxu1 %v795_v7  ;;  %v786_v15 = vsel %vm754_vm13, %v728_v62, %v770_v9 }
 0x2dd   :  { %vm755_vm15 = vcmp.gt.f32.partialorder %v731_v10, 0.0  ;;  %v771_v13 = vmul.f32 0.01, %v731_v10  ;;  %v789_v14 = vsel %vm757_vm12, %v739_v6, %v773_v63 }
 0x2de   :  { %v797_v19 = vpack.c.bf16 %v789_v14, %v788_v18 }
 0x2df   :  { %v787_v16 = vsel %vm755_vm15, %v731_v10, %v771_v13 }
 0x2e0   :  { %v796_v17 = vpack.c.bf16 %v787_v16, %v786_v15 }
 0x2e2   :  { %1305 = vmatprep.mubr.bf16.mxu1 %v796_v17 }
 0x2e3   :  { %1306 = vmatmul.mubr.bf16.gmra.mxu1 %v797_v19 }
 0x38b   :  { %v1295_v11 = vpop.f32.mrf.mxu1 }
 0x38c   :  { %v912_v21 = vadd.f32 %v1295_v11, %v1699_v20 }
 0x38d   :  { %v903_v22 = vpop.f32.mrf.mxu1 }
 0x38e   :  { %v968_v23 = vsub.f32 0.0, %v912_v21  ;;  %v904_v24 = vadd.f32 %v1699_v20, %v903_v22 }
 0x38f   :  { %v1296_v25 = vpop.f32.mrf.mxu1 }
 0x390   :  { %v986_v26 = vmul.f32 1.442695, %v968_v23  ;;  %v966_v27 = vsub.f32 0.0, %v904_v24  ;;  %v915_v28 = vadd.f32 %v1296_v25, %v1699_v20 }
 0x391   :  { %v906_v29 = vpop.f32.mrf.mxu1 }
 0x392   :  { %1351 = vpow2.f32 %v986_v26  ;;  %v982_v30 = vmul.f32 1.442695, %v966_v27  ;;  %v969_v31 = vsub.f32 0.0, %v915_v28  ;;  %v907_v32 = vadd.f32 %v1699_v20, %v906_v29 }
 0x393   :  { %v1299_v33 = vpop.f32.mrf.mxu1 }
 0x394   :  { %1353 = vpow2.f32 %v982_v30  ;;  %v988_v34 = vmul.f32 1.442695, %v969_v31  ;;  %v967_v35 = vsub.f32 0.0, %v907_v32  ;;  %v928_v36 = vadd.f32 %v1299_v33, %v1699_v20 }
 0x395   :  { %v919_v37 = vpop.f32.mrf.mxu1 }
 0x396   :  { %1355 = vpow2.f32 %v988_v34  ;;  %v984_v38 = vmul.f32 1.442695, %v967_v35  ;;  %v972_v39 = vsub.f32 0.0, %v928_v36  ;;  %v920_v40 = vadd.f32 %v1699_v20, %v919_v37 }
 0x397   :  { %v1300_v41 = vpop.f32.mrf.mxu1 }
 0x398   :  { %1357 = vpow2.f32 %v984_v38  ;;  %v994_v42 = vmul.f32 1.442695, %v972_v39  ;;  %v970_v43 = vsub.f32 0.0, %v920_v40  ;;  %v931_v44 = vadd.f32 %v1300_v41, %v1699_v20 }
 0x399   :  { %v922_v45 = vpop.f32.mrf.mxu1 }
 0x39a   :  { %1359 = vpow2.f32 %v994_v42  ;;  %v990_v47 = vmul.f32 1.442695, %v970_v43  ;;  %v973_v48 = vsub.f32 0.0, %v931_v44  ;;  %v923_v49 = vadd.f32 %v1699_v20, %v922_v45 }
 0x39b   :  { %v1303_v50 = vpop.f32.mrf.mxu1 }
 0x39c   :  { %1361 = vpow2.f32 %v990_v47  ;;  %v996_v51 = vmul.f32 1.442695, %v973_v48  ;;  %v971_v52 = vsub.f32 0.0, %v923_v49  ;;  %v944_v53 = vadd.f32 %v1303_v50, %v1699_v20 }
 0x39d   :  { %v935_v54 = vpop.f32.mrf.mxu1 }
 0x39e   :  { %1363 = vpow2.f32 %v996_v51  ;;  %v992_v55 = vmul.f32 1.442695, %v971_v52  ;;  %v976_v56 = vsub.f32 0.0, %v944_v53  ;;  %v936_v46 = vadd.f32 %v1699_v20, %v935_v54 }
 0x39f   :  { %v1352_v57 = vpop.eup %1351  ;;  %v1304_v58 = vpop.f32.mrf.mxu1 }
 0x3a0   :  { %v1016_v59 = vadd.f32 1.0, %v1352_v57  ;;  %1365 = vpow2.f32 %v992_v55  ;;  %v1002_v60 = vmul.f32 1.442695, %v976_v56  ;;  %v974_v61 = vsub.f32 0.0, %v936_v46 }
 0x3a1   :  { %v1354_v62 = vpop.eup %1353  ;;  %v947_v0 = vadd.f32 %v1304_v58, %v1699_v20  ;;  %v938_v1 = vpop.f32.mrf.mxu1 }
 0x3a2   :  { %1367 = vrcp.f32 %v1016_v59  ;;  %v1014_v2 = vadd.f32 1.0, %v1354_v62  ;;  %v998_v3 = vmul.f32 1.442695, %v974_v61  ;;  %v939_v4 = vadd.f32 %v1699_v20, %v938_v1 }
 0x3a3   :  { %v1356_v5 = vpop.eup %1355  ;;  %1369 = vpow2.f32 %v1002_v60  ;;  %v977_v6 = vsub.f32 0.0, %v947_v0  ;;  %v1307_v7 = vpop.f32.mrf.mxu1 }
 0x3a4   :  { %1371 = vrcp.f32 %v1014_v2  ;;  %v1017_v8 = vadd.f32 1.0, %v1356_v5  ;;  %v975_v9 = vsub.f32 0.0, %v939_v4  ;;  %v960_v63 = vadd.f32 %v1307_v7, %v1699_v20 }
 0x3a5   :  { %v1358_v10 = vpop.eup %1357  ;;  %1373 = vpow2.f32 %v998_v3  ;;  %v1004_v12 = vmul.f32 1.442695, %v977_v6  ;;  %v951_v13 = vpop.f32.mrf.mxu1 }
 0x3a6   :  { %1375 = vrcp.f32 %v1017_v8  ;;  %v1015_v14 = vadd.f32 1.0, %v1358_v10  ;;  %v1000_v15 = vmul.f32 1.442695, %v975_v9  ;;  %v980_v16 = vsub.f32 0.0, %v960_v63 }
 0x3a7   :  { %v1360_v17 = vpop.eup %1359  ;;  %1377 = vpow2.f32 %v1004_v12  ;;  %v952_v18 = vadd.f32 %v1699_v20, %v951_v13  ;;  %v1308_v19 = vpop.f32.mrf.mxu1 }
 0x3a8   :  { %1379 = vrcp.f32 %v1015_v14  ;;  %v1020_v11 = vadd.f32 1.0, %v1360_v17  ;;  %v1010_v21 = vmul.f32 1.442695, %v980_v16  ;;  %v963_v22 = vadd.f32 %v1308_v19, %v1699_v20 }
 0x3a9   :  { %v1362_v23 = vpop.eup %1361  ;;  %1381 = vpow2.f32 %v1000_v15  ;;  %v978_v24 = vsub.f32 0.0, %v952_v18  ;;  %v954_v25 = vpop.f32.mrf.mxu1 }
 0x3aa   :  { %1383 = vrcp.f32 %v1020_v11  ;;  %v1018_v26 = vadd.f32 1.0, %v1362_v23  ;;  %v981_v27 = vsub.f32 0.0, %v963_v22  ;;  %v955_v28 = vadd.f32 %v1699_v20, %v954_v25 }
 0x3ab   :  { %v1364_v29 = vpop.eup %1363  ;;  %1385 = vpow2.f32 %v1010_v21  ;;  %v1006_v30 = vmul.f32 1.442695, %v978_v24 }
 0x3ac   :  { %1387 = vrcp.f32 %v1018_v26  ;;  %v1021_v31 = vadd.f32 1.0, %v1364_v29  ;;  %v1012_v32 = vmul.f32 1.442695, %v981_v27  ;;  %v979_v33 = vsub.f32 0.0, %v955_v28 }
 0x3ad   :  { %v1366_v34 = vpop.eup %1365  ;;  %1389 = vpow2.f32 %v1006_v30 }
 0x3ae   :  { %1391 = vrcp.f32 %v1021_v31  ;;  %v1019_v35 = vadd.f32 1.0, %v1366_v34  ;;  %v1008_v36 = vmul.f32 1.442695, %v979_v33 }
 0x3af   :  { %v1368_v37 = vpop.eup %1367  ;;  %1393 = vpow2.f32 %v1012_v32 }
 0x3b0   :  { %v1370_v38 = vpop.eup %1369  ;;  %1048 = vst [vmem:[#allocation11 + $0x10] sm:$0xff] %v1368_v37  ;;  %1395 = vrcp.f32 %v1019_v35 }
 0x3b1   :  { %v1372_v39 = vpop.eup %1371  ;;  %v1024_v40 = vadd.f32 1.0, %v1370_v38  ;;  %1397 = vpow2.f32 %v1008_v36 }
 0x3b2   :  { %v1374_v20 = vpop.eup %1373  ;;  %1046 = vst [vmem:[#allocation11] sm:$0xff] %v1372_v39 }
 0x3b3   :  { %v1376_v41 = vpop.eup %1375  ;;  %1399 = vrcp.f32 %v1024_v40  ;;  %v1022_v42 = vadd.f32 1.0, %v1374_v20 }
 0x3b4   :  { %v1378_v43 = vpop.eup %1377  ;;  %1049 = vst [vmem:[#allocation11 + $0x18] sm:$0xff] %v1376_v41 }
 0x3b5   :  { %v1380_v44 = vpop.eup %1379  ;;  %1401 = vrcp.f32 %v1022_v42  ;;  %v1025_v45 = vadd.f32 1.0, %v1378_v43 }
 0x3b6   :  { %v1382_v47 = vpop.eup %1381  ;;  %1047 = vst [vmem:[#allocation11 + $0x8] sm:$0xff] %v1380_v44 }
 0x3b7   :  { %v1384_v48 = vpop.eup %1383  ;;  %1403 = vrcp.f32 %v1025_v45  ;;  %v1023_v49 = vadd.f32 1.0, %v1382_v47 }
 0x3b8   :  { %v1386_v50 = vpop.eup %1385  ;;  %1052 = vst [vmem:[#allocation11 + $0x30] sm:$0xff] %v1384_v48 }
 0x3b9   :  { %v1388_v51 = vpop.eup %1387  ;;  %1405 = vrcp.f32 %v1023_v49  ;;  %v1028_v52 = vadd.f32 1.0, %v1386_v50 }
 0x3ba   :  { %v1390_v53 = vpop.eup %1389  ;;  %1050 = vst [vmem:[#allocation11 + $0x20] sm:$0xff] %v1388_v51 }
 0x3bb   :  { %v1392_v54 = vpop.eup %1391  ;;  %1407 = vrcp.f32 %v1028_v52  ;;  %v1026_v55 = vadd.f32 1.0, %v1390_v53 }
 0x3bc   :  { %v1394_v56 = vpop.eup %1393  ;;  %1053 = vst [vmem:[#allocation11 + $0x38] sm:$0xff] %v1392_v54 }
 0x3bd   :  { %v1396_v46 = vpop.eup %1395  ;;  %1409 = vrcp.f32 %v1026_v55  ;;  %v1029_v57 = vadd.f32 1.0, %v1394_v56 }
 0x3be   :  { %v1398_v58 = vpop.eup %1397  ;;  %1051 = vst [vmem:[#allocation11 + $0x28] sm:$0xff] %v1396_v46 }
 0x3bf   :  { %1411 = vrcp.f32 %v1029_v57  ;;  %v1027_v59 = vadd.f32 1.0, %v1398_v58 }
 0x3c0   :  { %v1400_v60 = vpop.eup %1399 }
 0x3c1   :  { %1056 = vst [vmem:[#allocation11 + $0x50] sm:$0xff] %v1400_v60  ;;  %1413 = vrcp.f32 %v1027_v59 }
 0x3c2   :  { %v1402_v61 = vpop.eup %1401 }
 0x3c3   :  { %1054 = vst [vmem:[#allocation11 + $0x40] sm:$0xff] %v1402_v61 }
 0x3c4   :  { %v1404_v62 = vpop.eup %1403 }
 0x3c5   :  { %1057 = vst [vmem:[#allocation11 + $0x58] sm:$0xff] %v1404_v62 }
 0x3c6   :  { %v1406_v0 = vpop.eup %1405 }
 0x3c7   :  { %1055 = vst [vmem:[#allocation11 + $0x48] sm:$0xff] %v1406_v0 }
 0x3c8   :  { %v1408_v1 = vpop.eup %1407 }
 0x3c9   :  { %1060 = vst [vmem:[#allocation11 + $0x70] sm:$0xff] %v1408_v1 }
 0x3ca   :  { %v1410_v2 = vpop.eup %1409 }
 0x3cb   :  { %1058 = vst [vmem:[#allocation11 + $0x60] sm:$0xff] %v1410_v2 }
 0x3cc   :  { %v1412_v3 = vpop.eup %1411 }
 0x3cd   :  { %1061 = vst [vmem:[#allocation11 + $0x78] sm:$0xff] %v1412_v3 }
 0x3ce   :  { %v1414_v4 = vpop.eup %1413 }
 0x3cf   :  { %1059 = vst [vmem:[#allocation11 + $0x68] sm:$0xff] %v1414_v4 }
 0x3d0   :  { %1526 = shalt.err (!%p1523_p1)
}
 0x3d1   :  { %1073 = dma.vmem_to_hbm [thread:$0]  %s1068_s17, 2048, %s1732_s9, [#allocation4], %s1548_s23, %s1548_s23, %s1549_s24  }
 0x3d2   :  { %1541 = dma.done.wait [#allocation4], 2048  }
 0x3d3   :  { %1542 = vsyncadd [#allocation4], 4294965248 }
 0x3d4   :  { %1077 = vsyncpa [#allocation3], 1 }
 0x3d5   :  { %1078 = vsyncpa [#allocation6], 1 }
 0x3d6   :  { %1079 = vsyncpa [#allocation9], 1 }
 0x3d7   :  { %1080 = vsyncpa [#allocation4], 1 }

</bundles_post_ra>
